<compile_context>
chip_gen: v6e
topology: v6e:2x2x1
jax: 0.10.0
libtpu: 0.0.40
codegen_flags: <defaults>
</compile_context>

<pallas_src>
import functools

import jax
import jax.numpy as jnp
from jax import lax
from jax.experimental import pallas as pl
from jax.experimental.pallas import tpu as pltpu


def _round_up(x, m):
    return ((x + m - 1) // m) * m


# ----------------------------------------------------------------------------- Pallas kernel ---
def gin_fused_kernel(
    # --- inputs (all resident in VMEM / SMEM for the whole kernel) ---
    x0_ref,     # [Np, Dp]     f32   atom-encoded h^0 (zero padded)
    gmat_ref,   # [Ep, Np]     bf16  one-hot gather matrix   (row e picks node src[e])
    smat_ref,   # [Np, Ep]     bf16  one-hot scatter matrix  (row v sums edges with dst == v)
    eemb_ref,   # [L, Ep, Dp]  bf16  per-layer bond-encoder edge embeddings
    eps_ref,    # [L]          f32   GIN eps per layer (SMEM)
    w1_ref,     # [L, Dp, Hp]  bf16  mlp.Linear1 weight with mlp.BatchNorm folded in
    t1_ref,     # [L, 1, Hp]   f32   folded bias/shift
    w2_ref,     # [L, Hp, Dp]  bf16  mlp.Linear2 weight with outer BatchNorm folded in
    t2_ref,     # [L, 1, Dp]   f32   folded bias/shift
    # --- output ---
    out_ref,    # [Np, Dp]     f32   node representation (JK='last')
    *,
    num_layer: int,
    n_valid: int,
):
    h = x0_ref[...]                                            # [Np, Dp] f32
    gmat = gmat_ref[...]                                       # [Ep, Np] bf16
    smat = smat_ref[...]                                       # [Np, Ep] bf16
    row_ok = lax.broadcasted_iota(jnp.int32, h.shape, 0) < n_valid

    for layer in range(num_layer):                             # fully unrolled (static)
        # --- GIN message passing on the MXU ---
        # msg[e] = relu(h[src[e]] + eemb[e])   via   G @ h
        gathered = jnp.dot(gmat, h.astype(jnp.bfloat16),
                           preferred_element_type=jnp.float32)                   # [Ep, Dp]
        msg = jnp.maximum(gathered + eemb_ref[layer].astype(jnp.float32), 0.0)
        # aggr[v] = sum_{e : dst[e] == v} msg[e]   via   S @ msg
        aggr = jnp.dot(smat, msg.astype(jnp.bfloat16),
                       preferred_element_type=jnp.float32)                       # [Np, Dp]

        # --- (1 + eps) * h + aggr, then MLP (bias + BatchNorm folded, eval mode) ---
        z = (1.0 + eps_ref[layer]) * h + aggr                                    # [Np, Dp]
        h1 = jnp.dot(z.astype(jnp.bfloat16), w1_ref[layer],
                     preferred_element_type=jnp.float32) + t1_ref[layer]         # [Np, Hp]
        h1 = jnp.maximum(h1, 0.0)
        h2 = jnp.dot(h1.astype(jnp.bfloat16), w2_ref[layer],
                     preferred_element_type=jnp.float32) + t2_ref[layer]         # [Np, Dp]

        # Zero padded node rows so the folded-bias garbage never propagates.
        h2 = jnp.where(row_ok, h2, 0.0)

        # F.relu between layers (dropout = identity in eval); last layer stays linear (JK='last')
        h = jnp.maximum(h2, 0.0) if layer != num_layer - 1 else h2

    out_ref[...] = h


def gin_fused_call(x0, gmat, smat, eemb, eps, w1, t1, w2, t2, *, num_layer, n_valid):
    """All GIN layers fused into a single (grid-less) pallas_call, everything VMEM-resident."""
    np_, dp = x0.shape
    ep = gmat.shape[0]
    hp = w1.shape[2]

    flops = int(num_layer * (2 * ep * np_ * dp      # gather matmul
                             + 2 * np_ * ep * dp    # scatter matmul
                             + 2 * np_ * dp * hp    # MLP linear 1
                             + 2 * np_ * hp * dp))  # MLP linear 2
    bytes_accessed = int(
        x0.size * 4 + gmat.size * 2 + smat.size * 2 + eemb.size * 2
        + w1.size * 2 + w2.size * 2 + t1.size * 4 + t2.size * 4
        + eps.size * 4 + np_ * dp * 4
    )

    vspec = pl.BlockSpec(memory_space=pltpu.MemorySpace.VMEM)
    return pl.pallas_call(
        functools.partial(gin_fused_kernel, num_layer=num_layer, n_valid=n_valid),
        out_shape=jax.ShapeDtypeStruct((np_, dp), jnp.float32),
        in_specs=[
            vspec,                                              # x0
            vspec,                                              # gather one-hot
            vspec,                                              # scatter one-hot
            vspec,                                              # edge embeddings [L, Ep, Dp]
            pl.BlockSpec(memory_space=pltpu.MemorySpace.SMEM),  # eps [L]
            vspec,                                              # W1 folded (bf16)
            vspec,                                              # t1 folded
            vspec,                                              # W2 folded (bf16)
            vspec,                                              # t2 folded
        ],
        out_specs=vspec,
        cost_estimate=pl.CostEstimate(flops=flops, transcendentals=0,
                                      bytes_accessed=bytes_accessed),
    )(x0, gmat, smat, eemb, eps, w1, t1, w2, t2)


# ----------------------------------------------------------------------------- glue / params ---
def fold_bn(gamma, beta, running_mean, running_var, eps=1e-5):
    scale = gamma / jnp.sqrt(running_var + eps)
    shift = beta - running_mean * scale
    return scale, shift


def embedding_sum(tables, feats):
    """AtomEncoder / BondEncoder: sum of per-feature embedding lookups (glue, plain JAX)."""
    out = jnp.zeros((feats.shape[0], tables[0].shape[1]), jnp.float32)
    for f, tab in enumerate(tables):
        out = out + tab[feats[:, f]]
    return out


def init_params(key, num_layer, emb_dim, atom_vocabs, bond_vocabs):
    n_keys = len(atom_vocabs) + num_layer * (len(bond_vocabs) + 4)
    keys = iter(jax.random.split(key, n_keys))
    d, d2 = emb_dim, 2 * emb_dim
    p = {
        "atom_tables": [jax.random.uniform(next(keys), (v, d), jnp.float32, -0.1, 0.1)
                        for v in atom_vocabs],
        "bond_tables_per_layer": [],
        "layers": [],
    }
    for _ in range(num_layer):
        p["bond_tables_per_layer"].append(
            [jax.random.uniform(next(keys), (v, d), jnp.float32, -0.1, 0.1)
             for v in bond_vocabs])
        w1 = jax.random.uniform(next(keys), (d, d2), jnp.float32, -1.0, 1.0) / jnp.sqrt(d)
        b1 = jax.random.uniform(next(keys), (d2,), jnp.float32, -1.0, 1.0) / jnp.sqrt(d)
        w2 = jax.random.uniform(next(keys), (d2, d), jnp.float32, -1.0, 1.0) / jnp.sqrt(d2)
        b2 = jax.random.uniform(next(keys), (d,), jnp.float32, -1.0, 1.0) / jnp.sqrt(d2)
        # BatchNorm1d default init: gamma=1, beta=0, running_mean=0, running_var=1 (eval stats)
        s1, t1 = fold_bn(jnp.ones(d2), jnp.zeros(d2), jnp.zeros(d2), jnp.ones(d2))
        s2, t2 = fold_bn(jnp.ones(d), jnp.zeros(d), jnp.zeros(d), jnp.ones(d))
        p["layers"].append(dict(
            eps=jnp.zeros((), jnp.float32),   # torch.Tensor([0])
            w1=w1, b1=b1, s1=s1, t1=t1,
            w2=w2, b2=b2, s2=s2, t2=t2,
        ))
    return p


def gnn_node_forward(params, x_feats, edge_index, edge_attr, num_layer):
    """GNN_node.forward (gin, JK='last', residual=False, eval mode) via the fused kernel."""
    n = x_feats.shape[0]
    e = edge_attr.shape[0]
    d = params["atom_tables"][0].shape[1]
    dp = _round_up(d, 128)            # lane-dense node/emb dim
    hp = _round_up(2 * d, 128)        # lane-dense hidden dim
    np_ = _round_up(n, 8)
    ep = _round_up(e, 8)

    # h_list[0] = atom_encoder(x), zero-padded (padded rows/lanes are masked in the kernel)
    h0 = embedding_sum(params["atom_tables"], x_feats)
    x0 = jnp.zeros((np_, dp), jnp.float32).at[:n, :d].set(h0)

    # One-hot gather / scatter matrices for MXU message passing.
    # Padded edges have all-zero rows/cols; padded nodes are never referenced.
    src = edge_index[0].astype(jnp.int32)
    dst = edge_index[1].astype(jnp.int32)
    eids = jnp.arange(e, dtype=jnp.int32)
    gmat = jnp.zeros((ep, np_), jnp.float32).at[eids, src].set(1.0).astype(jnp.bfloat16)
    smat = jnp.zeros((np_, ep), jnp.float32).at[dst, eids].set(1.0).astype(jnp.bfloat16)

    # Per-layer bond-encoder embeddings, stacked [L, Ep, Dp] (bf16 -> half the VMEM/DMA bytes)
    eembs = []
    for layer in range(num_layer):
        ee = embedding_sum(params["bond_tables_per_layer"][layer], edge_attr)
        eembs.append(jnp.zeros((ep, dp), jnp.float32).at[:e, :d].set(ee))
    eemb_s = jnp.stack(eembs).astype(jnp.bfloat16)

    # Fold Linear bias + BatchNorm (eval) into weights; pad, stack, cast matmul weights bf16
    w1s, t1s, w2s, t2s, epss = [], [], [], [], []
    for lp in params["layers"]:
        w1f = lp["w1"] * lp["s1"][None, :]
        t1f = lp["b1"] * lp["s1"] + lp["t1"]
        w2f = lp["w2"] * lp["s2"][None, :]
        t2f = lp["b2"] * lp["s2"] + lp["t2"]
        w1s.append(jnp.zeros((dp, hp), jnp.float32).at[:d, :2 * d].set(w1f).astype(jnp.bfloat16))
        t1s.append(jnp.zeros((1, hp), jnp.float32).at[0, :2 * d].set(t1f))
        w2s.append(jnp.zeros((hp, dp), jnp.float32).at[:2 * d, :d].set(w2f).astype(jnp.bfloat16))
        t2s.append(jnp.zeros((1, dp), jnp.float32).at[0, :d].set(t2f))
        epss.append(lp["eps"])
    w1_s, t1_s = jnp.stack(w1s), jnp.stack(t1s)
    w2_s, t2_s = jnp.stack(w2s), jnp.stack(t2s)
    eps_s = jnp.stack(epss).astype(jnp.float32)       # [L]

    out = gin_fused_call(x0, gmat, smat, eemb_s, eps_s, w1_s, t1_s, w2_s, t2_s,
                         num_layer=num_layer, n_valid=n)
    return out[:n, :d]   # JK == 'last'


def gnn_node_reference(params, x_feats, edge_index, edge_attr, num_layer):
    """Pure-JAX f32 reference with the exact module semantics (eval mode)."""
    h = embedding_sum(params["atom_tables"], x_feats)
    src, dst = edge_index[0], edge_index[1]
    n = h.shape[0]
    for layer in range(num_layer):
        lp = params["layers"][layer]
        eemb = embedding_sum(params["bond_tables_per_layer"][layer], edge_attr)
        msg = jnp.maximum(h[src] + eemb, 0.0)
        aggr = jax.ops.segment_sum(msg, dst, num_segments=n)
        z = (1.0 + lp["eps"]) * h + aggr
        h1 = z @ lp["w1"] + lp["b1"]
        h1 = jnp.maximum(h1 * lp["s1"] + lp["t1"], 0.0)
        h2 = h1 @ lp["w2"] + lp["b2"]
        h2 = h2 * lp["s2"] + lp["t2"]
        if layer != num_layer - 1:
            h2 = jnp.maximum(h2, 0.0)
        h = h2
    return h


# ------------------------------------------------------------------------------------- main ---
if __name__ == "__main__":
    NUM_LAYER = 2
    EMB_DIM = 32
    N_NODES = 16
    N_EDGES = 32
    ATOM_VOCABS = (10, 6, 4)   # synthetic AtomEncoder feature vocab sizes
    BOND_VOCABS = (5, 3, 2)    # synthetic BondEncoder feature vocab sizes

    key = jax.random.PRNGKey(0)
    k_params, k_x, k_src, k_dst, k_ea = jax.random.split(key, 5)

    params = init_params(k_params, NUM_LAYER, EMB_DIM, ATOM_VOCABS, BOND_VOCABS)

    # synthetic batched_data: integer node features, edge_index, integer edge_attr
    x_feats = jnp.stack(
        [jax.random.randint(jax.random.fold_in(k_x, i), (N_NODES,), 0, v)
         for i, v in enumerate(ATOM_VOCABS)], axis=1).astype(jnp.int32)
    edge_index = jnp.stack([
        jax.random.randint(k_src, (N_EDGES,), 0, N_NODES),
        jax.random.randint(k_dst, (N_EDGES,), 0, N_NODES),
    ], axis=0).astype(jnp.int32)
    edge_attr = jnp.stack(
        [jax.random.randint(jax.random.fold_in(k_ea, i), (N_EDGES,), 0, v)
         for i, v in enumerate(BOND_VOCABS)], axis=1).astype(jnp.int32)
    # `batch` vector is carried by batched_data but unused in GNN_node.forward

    fwd = jax.jit(gnn_node_forward, static_argnums=(4,))
    node_representation = fwd(params, x_feats, edge_index, edge_attr, NUM_LAYER)
    node_representation = jax.block_until_ready(node_representation)

    assert node_representation.shape == (N_NODES, EMB_DIM)
    assert node_representation.dtype == jnp.float32

    # correctness vs. f32 reference (tolerance intentionally loose: bf16 matmul inputs /
    # bf16 one-hot message passing -- acceptable for inference)
    ref = gnn_node_reference(params, x_feats, edge_index, edge_attr, NUM_LAYER)
    err = float(jnp.max(jnp.abs(node_representation - ref)))
    assert err < 1e-1, f"max abs err vs reference: {err}"

    print("KERNEL_OK")
</pallas_src>

<mosaic_0001>
module attributes {stable_mosaic.version = 11 : i64} {
  func.func @gin_fused_kernel(%arg0: memref<16x128xf32, #tpu.memory_space<vmem>>, %arg1: memref<32x16xbf16, #tpu.memory_space<vmem>>, %arg2: memref<16x32xbf16, #tpu.memory_space<vmem>>, %arg3: memref<2x32x128xbf16, #tpu.memory_space<vmem>>, %arg4: memref<2xf32, #tpu.memory_space<smem>>, %arg5: memref<2x128x128xbf16, #tpu.memory_space<vmem>>, %arg6: memref<2x1x128xf32, #tpu.memory_space<vmem>>, %arg7: memref<2x128x128xbf16, #tpu.memory_space<vmem>>, %arg8: memref<2x1x128xf32, #tpu.memory_space<vmem>>, %arg9: memref<16x128xf32, #tpu.memory_space<vmem>>) attributes {dimension_semantics = [], scalar_prefetch = 0 : i64, scratch_operands = 0 : i64, tpu.core_type = #tpu.core_type<tc>} {
    %c0 = arith.constant 0 : index
    %c0_0 = arith.constant 0 : index
    %0 = vector.load %arg0[%c0, %c0_0] : memref<16x128xf32, #tpu.memory_space<vmem>>, vector<16x128xf32>
    %c0_1 = arith.constant 0 : index
    %c0_2 = arith.constant 0 : index
    %1 = vector.load %arg1[%c0_1, %c0_2] : memref<32x16xbf16, #tpu.memory_space<vmem>>, vector<32x16xbf16>
    %c0_3 = arith.constant 0 : index
    %c0_4 = arith.constant 0 : index
    %2 = vector.load %arg2[%c0_3, %c0_4] : memref<16x32xbf16, #tpu.memory_space<vmem>>, vector<16x32xbf16>
    %3 = tpu.iota {dimensions = array<i32: 0>} : vector<16x128xi32>
    %c16_i32 = arith.constant 16 : i32
    %4 = vector.broadcast %c16_i32 : i32 to vector<16x128xi32>
    %5 = arith.cmpi slt, %3, %4 : vector<16x128xi32>
    %6 = arith.truncf %0 : vector<16x128xf32> to vector<16x128xbf16>
    %cst = arith.constant dense<0.000000e+00> : vector<32x128xf32>
    %7 = tpu.matmul %1, %6, %cst {dimension_numbers = #tpu.dot_dimension_numbers<[1], [0], [0], [1], [0, 0, 1, 1], [], []>} : vector<32x16xbf16>, vector<16x128xbf16>, vector<32x128xf32> -> vector<32x128xf32>
    %c0_5 = arith.constant 0 : index
    %c0_6 = arith.constant 0 : index
    %c0_7 = arith.constant 0 : index
    %8 = vector.load %arg3[%c0_5, %c0_6, %c0_7] : memref<2x32x128xbf16, #tpu.memory_space<vmem>>, vector<1x32x128xbf16>
    %9 = vector.shape_cast %8 : vector<1x32x128xbf16> to vector<32x128xbf16>
    %10 = arith.extf %9 : vector<32x128xbf16> to vector<32x128xf32>
    %11 = arith.addf %7, %10 : vector<32x128xf32>
    %cst_8 = arith.constant 0.000000e+00 : f32
    %12 = vector.broadcast %cst_8 : f32 to vector<32x128xf32>
    %13 = arith.maximumf %11, %12 : vector<32x128xf32>
    %14 = arith.truncf %13 : vector<32x128xf32> to vector<32x128xbf16>
    %cst_9 = arith.constant dense<0.000000e+00> : vector<16x128xf32>
    %15 = tpu.matmul %2, %14, %cst_9 {dimension_numbers = #tpu.dot_dimension_numbers<[1], [0], [0], [1], [0, 0, 1, 1], [], []>} : vector<16x32xbf16>, vector<32x128xbf16>, vector<16x128xf32> -> vector<16x128xf32>
    %c0_10 = arith.constant 0 : index
    %16 = memref.load %arg4[%c0_10] : memref<2xf32, #tpu.memory_space<smem>>
    %cst_11 = arith.constant 1.000000e+00 : f32
    %17 = arith.addf %cst_11, %16 : f32
    %18 = vector.broadcast %17 : f32 to vector<16x128xf32>
    %19 = arith.mulf %18, %0 : vector<16x128xf32>
    %20 = arith.addf %19, %15 : vector<16x128xf32>
    %21 = arith.truncf %20 : vector<16x128xf32> to vector<16x128xbf16>
    %c0_12 = arith.constant 0 : index
    %c0_13 = arith.constant 0 : index
    %c0_14 = arith.constant 0 : index
    %22 = vector.load %arg5[%c0_12, %c0_13, %c0_14] : memref<2x128x128xbf16, #tpu.memory_space<vmem>>, vector<1x128x128xbf16>
    %23 = vector.shape_cast %22 : vector<1x128x128xbf16> to vector<128x128xbf16>
    %cst_15 = arith.constant dense<0.000000e+00> : vector<16x128xf32>
    %24 = tpu.matmul %21, %23, %cst_15 {dimension_numbers = #tpu.dot_dimension_numbers<[1], [0], [0], [1], [0, 0, 1, 1], [], []>} : vector<16x128xbf16>, vector<128x128xbf16>, vector<16x128xf32> -> vector<16x128xf32>
    %c0_16 = arith.constant 0 : index
    %c0_17 = arith.constant 0 : index
    %c0_18 = arith.constant 0 : index
    %25 = vector.load %arg6[%c0_16, %c0_17, %c0_18] : memref<2x1x128xf32, #tpu.memory_space<vmem>>, vector<1x1x128xf32>
    %26 = vector.shape_cast %25 : vector<1x1x128xf32> to vector<1x128xf32>
    %27 = vector.broadcast %26 : vector<1x128xf32> to vector<16x128xf32>
    %28 = arith.addf %24, %27 : vector<16x128xf32>
    %cst_19 = arith.constant 0.000000e+00 : f32
    %29 = vector.broadcast %cst_19 : f32 to vector<16x128xf32>
    %30 = arith.maximumf %28, %29 : vector<16x128xf32>
    %31 = arith.truncf %30 : vector<16x128xf32> to vector<16x128xbf16>
    %c0_20 = arith.constant 0 : index
    %c0_21 = arith.constant 0 : index
    %c0_22 = arith.constant 0 : index
    %32 = vector.load %arg7[%c0_20, %c0_21, %c0_22] : memref<2x128x128xbf16, #tpu.memory_space<vmem>>, vector<1x128x128xbf16>
    %33 = vector.shape_cast %32 : vector<1x128x128xbf16> to vector<128x128xbf16>
    %cst_23 = arith.constant dense<0.000000e+00> : vector<16x128xf32>
    %34 = tpu.matmul %31, %33, %cst_23 {dimension_numbers = #tpu.dot_dimension_numbers<[1], [0], [0], [1], [0, 0, 1, 1], [], []>} : vector<16x128xbf16>, vector<128x128xbf16>, vector<16x128xf32> -> vector<16x128xf32>
    %c0_24 = arith.constant 0 : index
    %c0_25 = arith.constant 0 : index
    %c0_26 = arith.constant 0 : index
    %35 = vector.load %arg8[%c0_24, %c0_25, %c0_26] : memref<2x1x128xf32, #tpu.memory_space<vmem>>, vector<1x1x128xf32>
    %36 = vector.shape_cast %35 : vector<1x1x128xf32> to vector<1x128xf32>
    %37 = vector.broadcast %36 : vector<1x128xf32> to vector<16x128xf32>
    %38 = arith.addf %34, %37 : vector<16x128xf32>
    %cst_27 = arith.constant 0.000000e+00 : f32
    %39 = vector.broadcast %cst_27 : f32 to vector<16x128xf32>
    %40 = arith.select %5, %38, %39 : vector<16x128xi1>, vector<16x128xf32>
    %cst_28 = arith.constant 0.000000e+00 : f32
    %41 = vector.broadcast %cst_28 : f32 to vector<16x128xf32>
    %42 = arith.maximumf %40, %41 : vector<16x128xf32>
    %43 = arith.truncf %42 : vector<16x128xf32> to vector<16x128xbf16>
    %cst_29 = arith.constant dense<0.000000e+00> : vector<32x128xf32>
    %44 = tpu.matmul %1, %43, %cst_29 {dimension_numbers = #tpu.dot_dimension_numbers<[1], [0], [0], [1], [0, 0, 1, 1], [], []>} : vector<32x16xbf16>, vector<16x128xbf16>, vector<32x128xf32> -> vector<32x128xf32>
    %c1 = arith.constant 1 : index
    %c0_30 = arith.constant 0 : index
    %c0_31 = arith.constant 0 : index
    %45 = vector.load %arg3[%c1, %c0_30, %c0_31] : memref<2x32x128xbf16, #tpu.memory_space<vmem>>, vector<1x32x128xbf16>
    %46 = vector.shape_cast %45 : vector<1x32x128xbf16> to vector<32x128xbf16>
    %47 = arith.extf %46 : vector<32x128xbf16> to vector<32x128xf32>
    %48 = arith.addf %44, %47 : vector<32x128xf32>
    %cst_32 = arith.constant 0.000000e+00 : f32
    %49 = vector.broadcast %cst_32 : f32 to vector<32x128xf32>
    %50 = arith.maximumf %48, %49 : vector<32x128xf32>
    %51 = arith.truncf %50 : vector<32x128xf32> to vector<32x128xbf16>
    %cst_33 = arith.constant dense<0.000000e+00> : vector<16x128xf32>
    %52 = tpu.matmul %2, %51, %cst_33 {dimension_numbers = #tpu.dot_dimension_numbers<[1], [0], [0], [1], [0, 0, 1, 1], [], []>} : vector<16x32xbf16>, vector<32x128xbf16>, vector<16x128xf32> -> vector<16x128xf32>
    %c1_34 = arith.constant 1 : index
    %53 = memref.load %arg4[%c1_34] : memref<2xf32, #tpu.memory_space<smem>>
    %cst_35 = arith.constant 1.000000e+00 : f32
    %54 = arith.addf %cst_35, %53 : f32
    %55 = vector.broadcast %54 : f32 to vector<16x128xf32>
    %56 = arith.mulf %55, %42 : vector<16x128xf32>
    %57 = arith.addf %56, %52 : vector<16x128xf32>
    %58 = arith.truncf %57 : vector<16x128xf32> to vector<16x128xbf16>
    %c1_36 = arith.constant 1 : index
    %c0_37 = arith.constant 0 : index
    %c0_38 = arith.constant 0 : index
    %59 = vector.load %arg5[%c1_36, %c0_37, %c0_38] : memref<2x128x128xbf16, #tpu.memory_space<vmem>>, vector<1x128x128xbf16>
    %60 = vector.shape_cast %59 : vector<1x128x128xbf16> to vector<128x128xbf16>
    %cst_39 = arith.constant dense<0.000000e+00> : vector<16x128xf32>
    %61 = tpu.matmul %58, %60, %cst_39 {dimension_numbers = #tpu.dot_dimension_numbers<[1], [0], [0], [1], [0, 0, 1, 1], [], []>} : vector<16x128xbf16>, vector<128x128xbf16>, vector<16x128xf32> -> vector<16x128xf32>
    %c1_40 = arith.constant 1 : index
    %c0_41 = arith.constant 0 : index
    %c0_42 = arith.constant 0 : index
    %62 = vector.load %arg6[%c1_40, %c0_41, %c0_42] : memref<2x1x128xf32, #tpu.memory_space<vmem>>, vector<1x1x128xf32>
    %63 = vector.shape_cast %62 : vector<1x1x128xf32> to vector<1x128xf32>
    %64 = vector.broadcast %63 : vector<1x128xf32> to vector<16x128xf32>
    %65 = arith.addf %61, %64 : vector<16x128xf32>
    %cst_43 = arith.constant 0.000000e+00 : f32
    %66 = vector.broadcast %cst_43 : f32 to vector<16x128xf32>
    %67 = arith.maximumf %65, %66 : vector<16x128xf32>
    %68 = arith.truncf %67 : vector<16x128xf32> to vector<16x128xbf16>
    %c1_44 = arith.constant 1 : index
    %c0_45 = arith.constant 0 : index
    %c0_46 = arith.constant 0 : index
    %69 = vector.load %arg7[%c1_44, %c0_45, %c0_46] : memref<2x128x128xbf16, #tpu.memory_space<vmem>>, vector<1x128x128xbf16>
    %70 = vector.shape_cast %69 : vector<1x128x128xbf16> to vector<128x128xbf16>
    %cst_47 = arith.constant dense<0.000000e+00> : vector<16x128xf32>
    %71 = tpu.matmul %68, %70, %cst_47 {dimension_numbers = #tpu.dot_dimension_numbers<[1], [0], [0], [1], [0, 0, 1, 1], [], []>} : vector<16x128xbf16>, vector<128x128xbf16>, vector<16x128xf32> -> vector<16x128xf32>
    %c1_48 = arith.constant 1 : index
    %c0_49 = arith.constant 0 : index
    %c0_50 = arith.constant 0 : index
    %72 = vector.load %arg8[%c1_48, %c0_49, %c0_50] : memref<2x1x128xf32, #tpu.memory_space<vmem>>, vector<1x1x128xf32>
    %73 = vector.shape_cast %72 : vector<1x1x128xf32> to vector<1x128xf32>
    %74 = vector.broadcast %73 : vector<1x128xf32> to vector<16x128xf32>
    %75 = arith.addf %71, %74 : vector<16x128xf32>
    %cst_51 = arith.constant 0.000000e+00 : f32
    %76 = vector.broadcast %cst_51 : f32 to vector<16x128xf32>
    %77 = arith.select %5, %75, %76 : vector<16x128xi1>, vector<16x128xf32>
    %c0_52 = arith.constant 0 : index
    %c0_53 = arith.constant 0 : index
    %78 = vector.load %arg9[%c0_52, %c0_53] : memref<16x128xf32, #tpu.memory_space<vmem>>, vector<16x128xf32>
    tpu.vector_store %arg9[%c0_52, %c0_53], %77 {strides = array<i32>} : memref<16x128xf32, #tpu.memory_space<vmem>>, vector<16x128xf32>,
    return
  }
}

</mosaic_0001>

<bundles_post_ra>
// kernel: gnn_node_forward.1
= control target key start
LH: loop header
LB: loop body
LE: loop exit
PB: predicated region body
PF: predicated region fallthrough
CT: control target
= control target key end

     0   :  { %14 = vsyncpa [#allocation4], 0  ;;  %s1417_s0 = inlined_call_operand.vmem [shape: f32[16,128], index: 0, kind: input, shape index: {}]   ;;  %s1418_s1 = inlined_call_operand.vmem [shape: bf16[32,16], index: 1, kind: input, shape index: {}]   ;;  %s1419_s2 = inlined_call_operand.vmem [shape: bf16[16,32], index: 2, kind: input, shape index: {}]   ;;  %s1420_s3 = inlined_call_operand.vmem [shape: bf16[2,32,128], index: 3, kind: input, shape index: {}]   ;;  %s1421_s4 = inlined_call_operand.vmem [shape: f32[2], index: 4, kind: input, shape index: {}]   ;;  %s1422_s5 = inlined_call_operand.vmem [shape: bf16[2,128,128], index: 5, kind: input, shape index: {}]   ;;  %s1423_s6 = inlined_call_operand.vmem [shape: f32[2,1,128], index: 6, kind: input, shape index: {}]   ;;  %s1424_s7 = inlined_call_operand.vmem [shape: bf16[2,128,128], index: 7, kind: input, shape index: {}]   ;;  %s1425_s8 = inlined_call_operand.vmem [shape: f32[2,1,128], index: 8, kind: input, shape index: {}]   ;;  %s1426_s9 = inlined_call_operand.hbm [shape: f32[16,128], index: 9, kind: output, shape index: {}]  }
   0x1   :  { %15 = vsyncpa [#allocation3], 0  ;;  %s30_s11 = sshll.u32 %s1421_s4, 4  ;;  %s31_s11 = int_to_ptr.vmem [resolvable:$true] %s30_s11 }
   0x2   :  { %s1096_s12 = scalar_lea.vmem %s31_s11, 16  ;;  %p1101_p1 = scmp.lt.s32.totalorder %s31_s11, %s31_s11 }
   0x3   :  { %p1097_p0 = scmp.ne.s32.totalorder %s31_s11, %s1096_s12  ;;  %p1102_p2 = scmp.lt.s32.totalorder %s1096_s12, %s1096_s12 }
   0x5   :  { %p1103_p3 = por %p1102_p2, %p1101_p1 }
   0x7   :  { %p1104_p4 = pnand %p1103_p3, %p1097_p0 }
   0x9   :  { %1107 = shalt.err (!%p1104_p4)
}
   0xa   :  { %s1132_s13 = smov [#allocation2]  }
   0xb   :  { %33 = dma.vmem_to_smem %s31_s11, 16, %s1132_s13, [#allocation4]  }
   0xc   :  { %1128 = dma.done.wait [#allocation4], 16  }
   0xd   :  { %1129 = vsyncadd [#allocation4], 4294967280 }
   0xe   :  { %45 = sfence }
   0xf   :  { %v1194_v0 = vld [vmem:[%s1417_s0] sm:$0xff]  ;;  %v1199_v1 = vld [vmem:[%s1417_s0 + $0x8] sm:$0xff]  ;;  %vm79_vm0 = vcmask 130048   ;;  %v1133_v5 = vmov 0.0   ;;  %vm1134_vm1 = vmmov 0   ;;  %v1064_v6 = vld [vmem:[%s1422_s5 + $0x38] sm:$0xff]  }
  0x10   :  { %v60_v2 = vpack.c.bf16 %v1199_v1, %v1194_v0  ;;  %v1206_v3 = vld [vmem:[%s1418_s1] sm:$0xff]   ;;  %v1211_v4 = vld [vmem:[%s1418_s1 + $0x8] sm:$0xff]   ;;  %953 = vmatprep.subr.bf16.mxu1 %v1133_v5  ;;  %957 = vmatprep.mubr.msk.bf16.mxu1 %vm1134_vm1, %v1133_v5  ;;  %v1065_v7 = vld [vmem:[%s1422_s5 + $0x30] sm:$0xff]   ;;  %vm146_vm2 = vcmask 261120   ;;  %s191_s26 = sld [smem:[#allocation2]] }
  0x11   :  { %949 = vmatprep.mubr.msk.bf16.mxu0 %vm79_vm0, %v1206_v3  ;;  %v1066_v8 = vld [vmem:[%s1422_s5 + $0x28] sm:$0xff]   ;;  %v1067_v9 = vld [vmem:[%s1422_s5 + $0x20] sm:$0xff]   ;;  %v1068_v10 = vld [vmem:[%s1422_s5 + $0x18] sm:$0xff]   ;;  %s827_s18 = sld [smem:[#allocation2 + $0x1]] }
  0x12   :  { %947 = vmatprep.subr.bf16.mxu0 %v60_v2  ;;  %v1069_v11 = vld [vmem:[%s1422_s5 + $0x10] sm:$0xff]   ;;  %v896_v12 = vld [vmem:[%s1420_s3 + $0x8] sm:$0xff]   ;;  %v881_v15 = vld [vmem:[%s1420_s3] sm:$0xff]  }
  0x13   :  { %948 = vmatpush3.bf16.msra.mxu0 %v60_v2  ;;  %v886_v13 = vunpack.c.l.bf16 %v896_v12  ;;  %v887_v16 = vunpack.c.h.bf16 %v896_v12  ;;  %v882_v19 = vunpack.c.l.bf16 %v881_v15  ;;  %v883_v20 = vunpack.c.h.bf16 %v881_v15  ;;  %v1257_v32 = vld [vmem:[%s1419_s2] sm:$0xff]   ;;  %v1070_v33 = vld [vmem:[%s1422_s5 + $0x8] sm:$0xff]   ;;  %v1072_v35 = vld [vmem:[%s1424_s7 + $0x38] sm:$0xff]  }
  0x14   :  { %961 = vmatprep.subr.bf16.mxu0 %v1133_v5  ;;  %v1071_v34 = vld [vmem:[%s1422_s5] sm:$0xff]   ;;  %v1073_v36 = vld [vmem:[%s1424_s7 + $0x30] sm:$0xff]   ;;  %v1074_v37 = vld [vmem:[%s1424_s7 + $0x28] sm:$0xff]  }
  0x15   :  { %v1075_v38 = vld [vmem:[%s1424_s7 + $0x20] sm:$0xff]   ;;  %v1076_v39 = vld [vmem:[%s1424_s7 + $0x18] sm:$0xff]   ;;  %v1077_v50 = vld [vmem:[%s1424_s7 + $0x10] sm:$0xff]  }
  0x16   :  { %950 = vmatmul.mubr.msk.bf16.vlgmr.msra.gmra.mxu0 %vm79_vm0, %v1211_v4  ;;  %s192_s27 = sadd.f32 1.0, %s191_s26  ;;  %v1078_v51 = vld [vmem:[%s1424_s7 + $0x8] sm:$0xff]   ;;  %v1079_v52 = vld [vmem:[%s1424_s7] sm:$0xff]   ;;  %v1081_v12 = vld [vmem:[%s1422_s5 + $0x70] sm:$0xff]  }
  0x17   :  { %977 = vmatprep.mubr.msk.bf16.mxu0 %vm1134_vm1, %v1133_v5  ;;  %962 = vmatpush3.bf16.msra.mxu0 %v1064_v6  ;;  %v802_v53 = vld [vmem:[%s1423_s6] ss:$0 sm:$0xff]  ;;  %v1085_v15 = vld [vmem:[%s1422_s5 + $0x50] sm:$0xff]   ;;  %s537_s19 = sadd.f32 1.0, %s827_s18 }
  0x18   :  { %963 = vmatprep.subr.bf16.mxu0 %v1133_v5  ;;  %v193_v40 = vstv %s192_s27  ;;  %v811_v63 = vld [vmem:[%s1425_s8] ss:$0 sm:$0xff] }
  0x19   :  { %v194_v42 = vmul.f32 %v193_v40, %v1194_v0  ;;  %v195_v43 = vmul.f32 %v193_v40, %v1199_v1  ;;  %v1090_v40 = vld [vmem:[%s1424_s7 + $0x68] sm:$0xff]  }
  0x1b   :  { %964 = vmatpush3.bf16.msra.mxu0 %v1065_v7 }
  0x1c   :  { %965 = vmatprep.subr.bf16.mxu0 %v1133_v5 }
  0x1f   :  { %966 = vmatpush3.bf16.msra.mxu0 %v1066_v8 }
  0x20   :  { %967 = vmatprep.subr.bf16.mxu0 %v1133_v5 }
  0x23   :  { %968 = vmatpush3.bf16.msra.mxu0 %v1067_v9 }
  0x24   :  { %969 = vmatprep.subr.bf16.mxu0 %v1133_v5 }
  0x27   :  { %970 = vmatpush3.bf16.msra.mxu0 %v1068_v10 }
  0x28   :  { %971 = vmatprep.subr.bf16.mxu0 %v1133_v5 }
  0x2b   :  { %972 = vmatpush3.bf16.msra.mxu0 %v1069_v11  ;;  %v1080_v11 = vld [vmem:[%s1422_s5 + $0x78] sm:$0xff]  }
  0x2c   :  { %973 = vmatprep.subr.bf16.mxu0 %v1133_v5 }
  0x2f   :  { %974 = vmatpush3.bf16.msra.mxu0 %v1070_v33 }
  0x30   :  { %975 = vmatprep.subr.bf16.mxu0 %v1133_v5 }
  0x33   :  { %976 = vmatpush3.bf16.msra.mxu0 %v1071_v34 }
  0xd6   :  { %v951_v14 = vpop.f32.mrf.mxu0 }
  0xd7   :  { %v129_v18 = vadd.f32 %v951_v14, %v886_v13  ;;  %v1082_v13 = vld [vmem:[%s1422_s5 + $0x68] sm:$0xff]   ;;  %v1084_v14 = vld [vmem:[%s1422_s5 + $0x58] sm:$0xff]  }
  0xd8   :  { %v120_v17 = vpop.f32.mrf.mxu0 }
  0xd9   :  { %v137_v24 = vmax.f32 %v129_v18, 0.0  ;;  %v121_v25 = vadd.f32 %v882_v19, %v120_v17  ;;  %v897_v19 = vld [vmem:[%s1420_s3 + $0x10] sm:$0xff]  }
  0xda   :  { %v952_v21 = vpop.f32.mrf.mxu0 }
  0xdb   :  { %v132_v22 = vadd.f32 %v952_v21, %v887_v16  ;;  %v135_v30 = vmax.f32 %v121_v25, 0.0  ;;  %v898_v16 = vld [vmem:[%s1420_s3 + $0x18] sm:$0xff]  }
  0xdc   :  { %v123_v23 = vpop.f32.mrf.mxu0  ;;  %v894_v17 = vunpack.c.l.bf16 %v898_v16 }
  0xdd   :  { %v138_v26 = vmax.f32 %v132_v22, 0.0  ;;  %v124_v27 = vadd.f32 %v883_v20, %v123_v23  ;;  %v895_v20 = vunpack.c.h.bf16 %v898_v16  ;;  %v890_v23 = vunpack.c.l.bf16 %v897_v19 }
  0xdf   :  { %v136_v28 = vmax.f32 %v124_v27, 0.0  ;;  %v140_v29 = vpack.c.bf16 %v138_v26, %v137_v24  ;;  %v891_v24 = vunpack.c.h.bf16 %v897_v19 }
  0xe1   :  { %954 = vmatpush3.bf16.msra.mxu1 %v140_v29  ;;  %v139_v31 = vpack.c.bf16 %v136_v28, %v135_v30 }
  0xe2   :  { %955 = vmatprep.subr.bf16.mxu1 %v1133_v5 }
  0xe5   :  { %956 = vmatpush3.bf16.msra.mxu1 %v139_v31 }
  0xe6   :  { %981 = vmatprep.subr.bf16.mxu1 %v1133_v5 }
  0xe8   :  { %958 = vmatmul.mubr.msk.bf16.vlgmr.msra.gmra.mxu1 %vm146_vm2, %v1257_v32 }
  0xe9   :  { %997 = vmatprep.mubr.msk.bf16.mxu1 %vm1134_vm1, %v1133_v5  ;;  %982 = vmatpush3.bf16.msra.mxu1 %v1072_v35 }
  0xea   :  { %983 = vmatprep.subr.bf16.mxu1 %v1133_v5 }
  0xed   :  { %984 = vmatpush3.bf16.msra.mxu1 %v1073_v36 }
  0xee   :  { %985 = vmatprep.subr.bf16.mxu1 %v1133_v5 }
  0xf1   :  { %986 = vmatpush3.bf16.msra.mxu1 %v1074_v37  ;;  %v1086_v37 = vld [vmem:[%s1422_s5 + $0x48] sm:$0xff]  }
  0xf2   :  { %987 = vmatprep.subr.bf16.mxu1 %v1133_v5 }
  0xf5   :  { %988 = vmatpush3.bf16.msra.mxu1 %v1075_v38  ;;  %v1087_v38 = vld [vmem:[%s1422_s5 + $0x40] sm:$0xff]  }
  0xf6   :  { %989 = vmatprep.subr.bf16.mxu1 %v1133_v5 }
  0xf9   :  { %990 = vmatpush3.bf16.msra.mxu1 %v1076_v39  ;;  %v1088_v39 = vld [vmem:[%s1424_s7 + $0x78] sm:$0xff]  }
  0xfa   :  { %991 = vmatprep.subr.bf16.mxu1 %v1133_v5 }
  0xfd   :  { %992 = vmatpush3.bf16.msra.mxu1 %v1077_v50 }
  0xfe   :  { %993 = vmatprep.subr.bf16.mxu1 %v1133_v5 }
 0x101   :  { %994 = vmatpush3.bf16.msra.mxu1 %v1078_v51 }
 0x102   :  { %995 = vmatprep.subr.bf16.mxu1 %v1133_v5 }
 0x105   :  { %996 = vmatpush3.bf16.msra.mxu1 %v1079_v52 }
 0x106   :  { %1007 = vmatprep.subr.bf16.mxu1 %v1133_v5 }
 0x1a8   :  { %v184_v41 = vpop.f32.mrf.mxu1 }
 0x1a9   :  { %v196_v46 = vadd.f32 %v194_v42, %v184_v41  ;;  %v1091_v41 = vld [vmem:[%s1424_s7 + $0x60] sm:$0xff]   ;;  %v1092_v42 = vld [vmem:[%s1424_s7 + $0x58] sm:$0xff]  }
 0x1aa   :  { %v959_v44 = vpop.f32.mrf.mxu1 }
 0x1ab   :  { %v538_v44 = vstv %s537_s19 }
 0x1ac   :  { %v187_v45 = vpop.f32.mrf.mxu1 }
 0x1ad   :  { %v197_v47 = vadd.f32 %v195_v43, %v187_v45 }
 0x1ae   :  { %v960_v48 = vpop.f32.mrf.mxu1 }
 0x1af   :  { %v198_v49 = vpack.c.bf16 %v197_v47, %v196_v46 }
 0x1b1   :  { %978 = vmatmul.mubr.bf16.vlgmr.msra.gmra.mxu0 %v198_v49 }
 0x1b2   :  { %1003 = vmatprep.mubr.msk.bf16.mxu0 %vm79_vm0, %v1206_v3 }
 0x271   :  { %v304_v54 = vpop.f32.mrf.mxu0 }
 0x272   :  { %v305_v56 = vadd.f32 %v802_v53, %v304_v54  ;;  %v1094_v54 = vld [vmem:[%s1424_s7 + $0x48] sm:$0xff]  }
 0x273   :  { %v979_v55 = vpop.f32.mrf.mxu0 }
 0x274   :  { %v311_v60 = vmax.f32 %v305_v56, 0.0  ;;  %v1095_v55 = vld [vmem:[%s1424_s7 + $0x40] sm:$0xff]  }
 0x275   :  { %v307_v57 = vpop.f32.mrf.mxu0  ;;  %v845_v56 = vld [vmem:[%s1423_s6 + $0x1] ss:$0 sm:$0xff] }
 0x276   :  { %v308_v58 = vadd.f32 %v802_v53, %v307_v57  ;;  %v1093_v53 = vld [vmem:[%s1424_s7 + $0x50] sm:$0xff]  }
 0x277   :  { %v980_v59 = vpop.f32.mrf.mxu0 }
 0x278   :  { %v312_v61 = vmax.f32 %v308_v58, 0.0 }
 0x27a   :  { %v313_v62 = vpack.c.bf16 %v312_v61, %v311_v60 }
 0x27c   :  { %998 = vmatmul.mubr.bf16.vlgmr.msra.gmra.mxu1 %v313_v62 }
 0x27d   :  { %1011 = vmatprep.mubr.msk.bf16.mxu1 %vm1134_vm1, %v1133_v5 }
 0x33c   :  { %v419_v0 = vpop.f32.mrf.mxu1 }
 0x33d   :  { %v1315_v2 = vadd.f32 %v811_v63, %v419_v0 }
 0x33e   :  { %v999_v1 = vpop.f32.mrf.mxu1 }
 0x33f   :  { %v428_v8 = vmax.f32 %v1315_v2, 0.0 }
 0x340   :  { %v422_v3 = vpop.f32.mrf.mxu1 }
 0x341   :  { %v1317_v6 = vadd.f32 %v811_v63, %v422_v3  ;;  %v539_v46 = vmul.f32 %v538_v44, %v428_v8 }
 0x342   :  { %v1000_v7 = vpop.f32.mrf.mxu1 }
 0x343   :  { %v429_v9 = vmax.f32 %v1317_v6, 0.0 }
 0x345   :  { %v430_v10 = vpack.c.bf16 %v429_v9, %v428_v8  ;;  %v540_v47 = vmul.f32 %v538_v44, %v429_v9 }
 0x347   :  { %1001 = vmatprep.subr.bf16.mxu0 %v430_v10 }
 0x348   :  { %1002 = vmatpush3.bf16.msra.mxu0 %v430_v10 }
 0x349   :  { %1015 = vmatprep.subr.bf16.mxu0 %v1133_v5 }
 0x34b   :  { %1004 = vmatmul.mubr.msk.bf16.vlgmr.msra.gmra.mxu0 %vm79_vm0, %v1211_v4  ;;  %v1083_v4 = vld [vmem:[%s1422_s5 + $0x60] sm:$0xff]  }
 0x34c   :  { %1031 = vmatprep.mubr.msk.bf16.mxu0 %vm1134_vm1, %v1133_v5  ;;  %1016 = vmatpush3.bf16.msra.mxu0 %v1080_v11 }
 0x34d   :  { %1017 = vmatprep.subr.bf16.mxu0 %v1133_v5 }
 0x350   :  { %1018 = vmatpush3.bf16.msra.mxu0 %v1081_v12 }
 0x351   :  { %1019 = vmatprep.subr.bf16.mxu0 %v1133_v5 }
 0x354   :  { %1020 = vmatpush3.bf16.msra.mxu0 %v1082_v13 }
 0x355   :  { %1021 = vmatprep.subr.bf16.mxu0 %v1133_v5 }
 0x358   :  { %1022 = vmatpush3.bf16.msra.mxu0 %v1083_v4 }
 0x359   :  { %1023 = vmatprep.subr.bf16.mxu0 %v1133_v5 }
 0x35c   :  { %1024 = vmatpush3.bf16.msra.mxu0 %v1084_v14 }
 0x35d   :  { %1025 = vmatprep.subr.bf16.mxu0 %v1133_v5 }
 0x360   :  { %1026 = vmatpush3.bf16.msra.mxu0 %v1085_v15 }
 0x361   :  { %1027 = vmatprep.subr.bf16.mxu0 %v1133_v5 }
 0x364   :  { %1028 = vmatpush3.bf16.msra.mxu0 %v1086_v37 }
 0x365   :  { %1029 = vmatprep.subr.bf16.mxu0 %v1133_v5 }
 0x368   :  { %1030 = vmatpush3.bf16.msra.mxu0 %v1087_v38 }
 0x40b   :  { %v1005_v18 = vpop.f32.mrf.mxu0 }
 0x40c   :  { %v483_v22 = vadd.f32 %v1005_v18, %v894_v17 }
 0x40d   :  { %v474_v21 = vpop.f32.mrf.mxu0 }
 0x40e   :  { %v491_v28 = vmax.f32 %v483_v22, 0.0  ;;  %v475_v29 = vadd.f32 %v890_v23, %v474_v21 }
 0x40f   :  { %v1006_v25 = vpop.f32.mrf.mxu0 }
 0x410   :  { %v486_v26 = vadd.f32 %v1006_v25, %v895_v20  ;;  %v489_v35 = vmax.f32 %v475_v29, 0.0 }
 0x411   :  { %v477_v27 = vpop.f32.mrf.mxu0 }
 0x412   :  { %v492_v30 = vmax.f32 %v486_v26, 0.0  ;;  %v478_v31 = vadd.f32 %v891_v24, %v477_v27 }
 0x414   :  { %v494_v33 = vpack.c.bf16 %v492_v30, %v491_v28  ;;  %v490_v34 = vmax.f32 %v478_v31, 0.0 }
 0x416   :  { %1008 = vmatpush3.bf16.msra.mxu1 %v494_v33  ;;  %v493_v36 = vpack.c.bf16 %v490_v34, %v489_v35 }
 0x417   :  { %1009 = vmatprep.subr.bf16.mxu1 %v1133_v5 }
 0x41a   :  { %1010 = vmatpush3.bf16.msra.mxu1 %v493_v36 }
 0x41b   :  { %1035 = vmatprep.subr.bf16.mxu1 %v1133_v5 }
 0x41d   :  { %1012 = vmatmul.mubr.msk.bf16.vlgmr.msra.gmra.mxu1 %vm146_vm2, %v1257_v32  ;;  %v1089_v32 = vld [vmem:[%s1424_s7 + $0x70] sm:$0xff]   ;;  %s1135_s7 = smov [#allocation5]  }
 0x41e   :  { %1051 = vmatprep.mubr.msk.bf16.mxu1 %vm1134_vm1, %v1133_v5  ;;  %1036 = vmatpush3.bf16.msra.mxu1 %v1088_v39  ;;  %s784_s28 = sshll.u32 %s1135_s7, 4  ;;  %s785_s28 = int_to_ptr.vmem [resolvable:$true] %s784_s28 }
 0x41f   :  { %1037 = vmatprep.subr.bf16.mxu1 %v1133_v5  ;;  %s1108_s6 = scalar_lea.vmem %s785_s28, 256  ;;  %p1113_p6 = scmp.lt.s32.totalorder %s785_s28, %s785_s28 }
 0x420   :  { %p1109_p5 = scmp.ne.s32.totalorder %s785_s28, %s1108_s6  ;;  %p1114_p7 = scmp.lt.s32.totalorder %s1108_s6, %s1108_s6 }
 0x422   :  { %1038 = vmatpush3.bf16.msra.mxu1 %v1089_v32  ;;  %p1115_p8 = por %p1114_p7, %p1113_p6 }
 0x423   :  { %1039 = vmatprep.subr.bf16.mxu1 %v1133_v5 }
 0x424   :  { %p1116_p9 = pnand %p1115_p8, %p1109_p5 }
 0x426   :  { %1040 = vmatpush3.bf16.msra.mxu1 %v1090_v40 }
 0x427   :  { %1041 = vmatprep.subr.bf16.mxu1 %v1133_v5 }
 0x42a   :  { %1042 = vmatpush3.bf16.msra.mxu1 %v1091_v41 }
 0x42b   :  { %1043 = vmatprep.subr.bf16.mxu1 %v1133_v5 }
 0x42e   :  { %1044 = vmatpush3.bf16.msra.mxu1 %v1092_v42 }
 0x42f   :  { %1045 = vmatprep.subr.bf16.mxu1 %v1133_v5 }
 0x432   :  { %1046 = vmatpush3.bf16.msra.mxu1 %v1093_v53 }
 0x433   :  { %1047 = vmatprep.subr.bf16.mxu1 %v1133_v5 }
 0x436   :  { %1048 = vmatpush3.bf16.msra.mxu1 %v1094_v54 }
 0x437   :  { %1049 = vmatprep.subr.bf16.mxu1 %v1133_v5  ;;  %v871_v5 = vld [vmem:[%s1425_s8 + $0x1] ss:$0 sm:$0xff] }
 0x43a   :  { %1050 = vmatpush3.bf16.msra.mxu1 %v1095_v55 }
 0x4dd   :  { %v529_v43 = vpop.f32.mrf.mxu1 }
 0x4de   :  { %v541_v49 = vadd.f32 %v539_v46, %v529_v43 }
 0x4df   :  { %v1013_v45 = vpop.f32.mrf.mxu1 }
 0x4e1   :  { %v532_v48 = vpop.f32.mrf.mxu1 }
 0x4e2   :  { %v542_v50 = vadd.f32 %v540_v47, %v532_v48 }
 0x4e3   :  { %v1014_v51 = vpop.f32.mrf.mxu1 }
 0x4e4   :  { %v543_v52 = vpack.c.bf16 %v542_v50, %v541_v49 }
 0x4e6   :  { %1032 = vmatmul.mubr.bf16.vlgmr.msra.gmra.mxu0 %v543_v52 }
 0x5a6   :  { %v651_v57 = vpop.f32.mrf.mxu0 }
 0x5a7   :  { %v652_v59 = vadd.f32 %v845_v56, %v651_v57 }
 0x5a8   :  { %v1033_v58 = vpop.f32.mrf.mxu0 }
 0x5a9   :  { %v658_v63 = vmax.f32 %v652_v59, 0.0 }
 0x5aa   :  { %v654_v60 = vpop.f32.mrf.mxu0 }
 0x5ab   :  { %v655_v61 = vadd.f32 %v845_v56, %v654_v60 }
 0x5ac   :  { %v1034_v62 = vpop.f32.mrf.mxu0 }
 0x5ad   :  { %v659_v0 = vmax.f32 %v655_v61, 0.0 }
 0x5af   :  { %v660_v1 = vpack.c.bf16 %v659_v0, %v658_v63 }
 0x5b1   :  { %1052 = vmatmul.mubr.bf16.vlgmr.msra.gmra.mxu1 %v660_v1 }
 0x671   :  { %v768_v2 = vpop.f32.mrf.mxu1 }
 0x672   :  { %v769_v3 = vadd.f32 %v871_v5, %v768_v2 }
 0x673   :  { %v1053_v6 = vpop.f32.mrf.mxu1 }
 0x674   :  { %777 = vst [vmem:[#allocation5] sm:$0xff] %v769_v3 }
 0x675   :  { %v771_v7 = vpop.f32.mrf.mxu1 }
 0x676   :  { %v772_v8 = vadd.f32 %v871_v5, %v771_v7 }
 0x677   :  { %v1054_v9 = vpop.f32.mrf.mxu1 }
 0x678   :  { %778 = vst [vmem:[#allocation5 + $0x8] sm:$0xff] %v772_v8 }
 0x679   :  { %1119 = shalt.err (!%p1116_p9)
}
 0x67a   :  { %s1136_s3 = smov 128   ;;  %s1137_s8 = smov 8  }
 0x67b   :  { %790 = dma.vmem_to_hbm [thread:$0]  %s785_s28, 256, %s1426_s9, [#allocation3], %s1136_s3, %s1136_s3, %s1137_s8  }
 0x67c   :  { %1130 = dma.done.wait [#allocation3], 256  }
 0x67d   :  { %1131 = vsyncadd [#allocation3], 4294967040 }
 0x67e   :  { %794 = vsyncpa [#allocation3], 1 }
 0x67f   :  { %795 = vsyncpa [#allocation4], 1 }

</bundles_post_ra>
